<compile_context>
chip_gen: v7x
topology: tpu7x:2x2x1
jax: 0.10.0
libtpu: 0.0.40
codegen_flags: <defaults>
</compile_context>

<pallas_src>
import jax
import jax.numpy as jnp
from jax.experimental import pallas as pl
from jax.experimental.pallas import tpu as pltpu

_LANE = 128     # f32 lane width
_SUBLANE = 8    # f32 sublane width


def _round_up(x: int, m: int) -> int:
    return ((x + m - 1) // m) * m


def _make_mlp_kernel(num_layers: int, padded_widths, output_dim: int):
    """Fused MLP kernel: (num_layers-1) x [Linear+ReLU] then Linear+tanh.

    Kernel signature: (x_ref, w0_ref, ..., w_{L-1}_ref, bias_all_ref, out_ref).
    padded_widths[i] is the lane-padded output width of layer i (static, 128-aligned bias
    offsets); output_dim is the real (unpadded) width stored to out_ref.
    """

    def kernel(x_ref, *refs):
        out_ref = refs[-1]
        b_all_ref = refs[-2]
        w_refs = refs[:-2]

        h = x_ref[...]                                # (TB, in_dim) already in MXU dtype for layer 0
        off = 0
        for i in range(num_layers):
            w = w_refs[i][...]                        # (in_pad, out_pad) weight dtype
            width = padded_widths[i]
            b = b_all_ref[:, off:off + width]         # (1, out_pad) f32, static 128-aligned slice
            off += width
            if h.dtype != w.dtype:
                h = h.astype(w.dtype)                 # f32 activations -> MXU dtype (bf16 path)
            h = jnp.dot(h, w, preferred_element_type=jnp.float32) + b   # f32 acc + f32 bias
            if i < num_layers - 1:
                h = jnp.maximum(h, 0.0)               # activation_fn = ReLU (VPU, f32)
            else:
                h = jnp.tanh(h)                       # output_activation_fn = tanh (EUP, f32)
        # Store only the real output columns: the unpadded (TB, output_dim) block keeps the
        # HBM writeback at the minimal byte count (padded lanes are never written back).
        out_ref[...] = h[:, :output_dim].astype(out_ref.dtype)

    return kernel


def deterministic_policy_forward(state, weights, biases, *,
                                 block_batch: int = 512,
                                 weight_dtype=jnp.bfloat16):
    """Run the DeterministicPolicyNetwork forward pass as a single Pallas kernel.

    state:   (B, input_dim) float32
    weights: list of (in_dim, out_dim) float32 (already transposed from torch layout)
    biases:  list of (out_dim,) float32
    block_batch: requested batch tile rows per grid step (balanced-tile adjusted).
    weight_dtype: jnp.bfloat16 (default perf path: native bf16 MXU, f32 accumulation) or
                  jnp.float32 (bit-faithful to the PyTorch module).
    returns: (B, output_dim) float32
    """
    num_layers = len(weights)
    B, input_dim = state.shape
    output_dim = weights[-1].shape[1]
    use_bf16 = (weight_dtype == jnp.bfloat16)

    # ---- pad hidden / output feature dims up to 128 lanes (zero padding is exact: padded
    #      pre-activations are 0 -> relu(0)=0 / tanh(0)=0, and the padded weight rows of the
    #      next layer are 0, so real outputs are unchanged). ----
    padded_widths = [_round_up(w.shape[1], _LANE) for w in weights]
    padded_weights, padded_biases = [], []
    prev_pad = input_dim                      # layer-0 in_dim stays unpadded (full-array block)
    for i, (w, b) in enumerate(zip(weights, biases)):
        in_d, out_d = w.shape
        out_pad = padded_widths[i]
        w_p = jnp.zeros((prev_pad, out_pad), jnp.float32).at[:in_d, :out_d].set(w)
        b_p = jnp.zeros((1, out_pad), jnp.float32).at[0, :out_d].set(b)
        padded_weights.append(w_p.astype(weight_dtype))
        padded_biases.append(b_p)             # biases stay f32 (added after the f32 accumulate)
        prev_pad = out_pad
    bias_all = jnp.concatenate(padded_biases, axis=1)     # (1, sum(padded_widths)) f32

    # TODO(synk): on v7x an fp8 weight path (fp8 weights x bf16 activations, f32 accumulate)
    # would halve weight bytes again; not enabled here to stay portable to v5e/v6e.

    # ---- stream the state in the MXU dtype: halves the only per-tile input DMA and removes
    #      the layer-0 per-tile f32->bf16 cast. ----
    if use_bf16:
        state = state.astype(jnp.bfloat16)
    state_itemsize = 2 if use_bf16 else 4

    # ---- balanced batch tiling: no full-extra-tile padding; force >=2 grid steps whenever
    #      the batch allows it so ("parallel",) can shard tiles across v7x's two TCs. ----
    g = 16 if use_bf16 else _SUBLANE          # sublane granule of the batch-tiled refs
    bg = _round_up(B, g)
    tb_req = _round_up(min(block_batch, bg), g)
    n = pl.cdiv(bg, tb_req)
    if n == 1 and bg >= 2 * g:
        n = 2
    tb = _round_up(pl.cdiv(bg, n), g)
    b_padded = n * tb
    if b_padded != B:
        state = jnp.pad(state, ((0, b_padded - B), (0, 0)))
    grid = (n,)

    # ---- explicit scoped-VMEM budget: single-buffered constants + double-buffered batch
    #      tiles + f32 per-tile intermediates, with margin; clamped to v7x-safe 64 MiB. ----
    max_w = max(padded_widths)
    const_bytes = sum(int(w.size) * w.dtype.itemsize for w in padded_weights)
    const_bytes += int(bias_all.size) * 4
    tile_bytes = 2 * (tb * input_dim * state_itemsize + tb * output_dim * 4)
    inter_bytes = 6 * tb * max_w * 4
    vmem_limit = int(min(max(const_bytes + tile_bytes + inter_bytes + (2 << 20), 16 << 20),
                         64 << 20))

    def const_spec(arr):
        # Constant block index across the whole grid; single-buffered (fetched once).
        return pl.BlockSpec(arr.shape, lambda i: (0, 0), pipeline_mode=pl.Buffered(1))

    in_specs = [pl.BlockSpec((tb, input_dim), lambda i: (i, 0))]       # batch-tiled state
    in_specs += [const_spec(w) for w in padded_weights]                # VMEM-resident weights
    in_specs += [const_spec(bias_all)]                                 # single packed bias
    out_spec = pl.BlockSpec((tb, output_dim), lambda i: (i, 0))        # unpadded output block

    kernel = _make_mlp_kernel(num_layers, padded_widths, output_dim)

    out = pl.pallas_call(
        kernel,
        out_shape=jax.ShapeDtypeStruct((b_padded, output_dim), jnp.float32),
        grid=grid,
        in_specs=in_specs,
        out_specs=out_spec,
        compiler_params=pltpu.CompilerParams(
            dimension_semantics=("parallel",),   # shard batch tiles across TCs (v7x megacore)
            vmem_limit_bytes=vmem_limit,
        ),
    )(state, *padded_weights, bias_all)

    # Strip batch padding; output feature dim is already unpadded.
    return out[:B]


def init_params(key, input_dim, output_dim, hidden_dims):
    """Deterministic synthetic init mirroring the PyTorch module's reset_parameters.

    - hidden/input layer weights: U(-lim, lim), lim = 1/sqrt(weight.size(0)) = 1/sqrt(out_features)
      (faithfully reproducing hidden_init's use of size()[0])
    - output layer weights: U(-0.003, 0.003)
    - biases: PyTorch nn.Linear default, U(-1/sqrt(in_features), 1/sqrt(in_features))
    Weights are returned transposed to (in_dim, out_dim).
    """
    dims = [input_dim] + list(hidden_dims) + [output_dim]
    weights, biases = [], []
    for i in range(len(dims) - 1):
        in_d, out_d = dims[i], dims[i + 1]
        key, kw, kb = jax.random.split(key, 3)
        if i == len(dims) - 2:
            w_lim = 0.003
        else:
            w_lim = 1.0 / jnp.sqrt(jnp.float32(out_d))   # hidden_init uses size()[0]
        b_lim = 1.0 / jnp.sqrt(jnp.float32(in_d))
        w = jax.random.uniform(kw, (in_d, out_d), jnp.float32, -w_lim, w_lim)
        b = jax.random.uniform(kb, (out_d,), jnp.float32, -b_lim, b_lim)
        weights.append(w)
        biases.append(b)
    return weights, biases


def reference_forward(state, weights, biases):
    """Pure-JAX reference for correctness checking."""
    h = state
    for i, (w, b) in enumerate(zip(weights, biases)):
        h = h @ w + b
        if i < len(weights) - 1:
            h = jnp.maximum(h, 0.0)
        else:
            h = jnp.tanh(h)
    return h


if __name__ == "__main__":
    # Shapes consistent with the module: batch=8, input_dim=16, hidden=(32, 32), output=4
    batch = 8
    input_dim = 16
    hidden_dims = (32, 32)
    output_dim = 4

    key = jax.random.PRNGKey(0)
    key, kstate = jax.random.split(key)
    state = jax.random.normal(kstate, (batch, input_dim), jnp.float32)
    weights, biases = init_params(key, input_dim, output_dim, hidden_dims)

    ref = reference_forward(state, weights, biases)

    # f32 weights: numerically faithful to the PyTorch module.
    out_f32 = deterministic_policy_forward(state, weights, biases, weight_dtype=jnp.float32)
    out_f32 = jax.block_until_ready(out_f32)
    assert out_f32.shape == (batch, output_dim)
    assert jnp.allclose(out_f32, ref, atol=1e-5, rtol=1e-5), "Pallas f32 output mismatch vs reference"

    # Default perf path: bf16 weights + bf16 streamed state into the MXU, f32 accumulation.
    out_bf16 = deterministic_policy_forward(state, weights, biases)
    out_bf16 = jax.block_until_ready(out_bf16)
    assert out_bf16.shape == (batch, output_dim)
    assert jnp.allclose(out_bf16, ref, atol=3e-2, rtol=3e-2), "Pallas bf16 output mismatch vs reference"

    # Multi-tile grid path: balanced tiling (520 rows -> 2 tiles, not a 1024-row round-up),
    # pipelining across tiles, and batch-padding strip.
    big_batch = 520
    key, kbig = jax.random.split(key)
    big_state = jax.random.normal(kbig, (big_batch, input_dim), jnp.float32)
    big_ref = reference_forward(big_state, weights, biases)

    big_f32 = deterministic_policy_forward(big_state, weights, biases,
                                           weight_dtype=jnp.float32, block_batch=512)
    big_f32 = jax.block_until_ready(big_f32)
    assert big_f32.shape == (big_batch, output_dim)
    assert jnp.allclose(big_f32, big_ref, atol=1e-5, rtol=1e-5), "Pallas tiled f32 output mismatch"

    big_bf16 = deterministic_policy_forward(big_state, weights, biases, block_batch=512)
    big_bf16 = jax.block_until_ready(big_bf16)
    assert big_bf16.shape == (big_batch, output_dim)
    assert jnp.allclose(big_bf16, big_ref, atol=3e-2, rtol=3e-2), "Pallas tiled bf16 output mismatch"

    print("KERNEL_OK")
</pallas_src>

<mosaic_0001>
module attributes {stable_mosaic.version = 11 : i64} {
  func.func @kernel(%arg0: i32, %arg1: memref<8x16xf32, #tpu.memory_space<vmem>>, %arg2: memref<16x128xf32, #tpu.memory_space<vmem>>, %arg3: memref<128x128xf32, #tpu.memory_space<vmem>>, %arg4: memref<128x128xf32, #tpu.memory_space<vmem>>, %arg5: memref<1x384xf32, #tpu.memory_space<vmem>>, %arg6: memref<8x4xf32, #tpu.memory_space<vmem>>) attributes {dimension_semantics = [#tpu.dimension_semantics<parallel>], iteration_bounds = array<i64: 1>, scalar_prefetch = 0 : i64, scratch_operands = 0 : i64, tpu.core_type = #tpu.core_type<tc>, window_params = [{transform_indices = @transform_0, window_bounds = array<i64: 8, 16>}, {pipeline_mode = #tpu.pipeline_mode<synchronous>, transform_indices = @transform_1, window_bounds = array<i64: 16, 128>}, {pipeline_mode = #tpu.pipeline_mode<synchronous>, transform_indices = @transform_2, window_bounds = array<i64: 128, 128>}, {pipeline_mode = #tpu.pipeline_mode<synchronous>, transform_indices = @transform_3, window_bounds = array<i64: 128, 128>}, {pipeline_mode = #tpu.pipeline_mode<synchronous>, transform_indices = @transform_4, window_bounds = array<i64: 1, 384>}, {transform_indices = @transform_5, window_bounds = array<i64: 8, 4>}]} {
    %c0 = arith.constant 0 : index
    %c0_0 = arith.constant 0 : index
    %0 = vector.load %arg1[%c0, %c0_0] : memref<8x16xf32, #tpu.memory_space<vmem>>, vector<8x16xf32>
    %c0_1 = arith.constant 0 : index
    %c0_2 = arith.constant 0 : index
    %1 = vector.load %arg2[%c0_1, %c0_2] : memref<16x128xf32, #tpu.memory_space<vmem>>, vector<16x128xf32>
    %c0_3 = arith.constant 0 : index
    %c0_4 = arith.constant 0 : index
    %2 = vector.load %arg5[%c0_3, %c0_4] : memref<1x384xf32, #tpu.memory_space<vmem>>, vector<1x128xf32>
    %cst = arith.constant dense<0.000000e+00> : vector<8x128xf32>
    %3 = tpu.matmul %0, %1, %cst {dimension_numbers = #tpu.dot_dimension_numbers<[1], [0], [0], [1], [0, 0, 1, 1], [], []>} : vector<8x16xf32>, vector<16x128xf32>, vector<8x128xf32> -> vector<8x128xf32>
    %4 = vector.broadcast %2 : vector<1x128xf32> to vector<8x128xf32>
    %5 = arith.addf %3, %4 : vector<8x128xf32>
    %cst_5 = arith.constant 0.000000e+00 : f32
    %6 = vector.broadcast %cst_5 : f32 to vector<8x128xf32>
    %7 = arith.maximumf %5, %6 : vector<8x128xf32>
    %c0_6 = arith.constant 0 : index
    %c0_7 = arith.constant 0 : index
    %8 = vector.load %arg3[%c0_6, %c0_7] : memref<128x128xf32, #tpu.memory_space<vmem>>, vector<128x128xf32>
    %c0_8 = arith.constant 0 : index
    %c128 = arith.constant 128 : index
    %9 = vector.load %arg5[%c0_8, %c128] : memref<1x384xf32, #tpu.memory_space<vmem>>, vector<1x128xf32>
    %cst_9 = arith.constant dense<0.000000e+00> : vector<8x128xf32>
    %10 = tpu.matmul %7, %8, %cst_9 {dimension_numbers = #tpu.dot_dimension_numbers<[1], [0], [0], [1], [0, 0, 1, 1], [], []>} : vector<8x128xf32>, vector<128x128xf32>, vector<8x128xf32> -> vector<8x128xf32>
    %11 = vector.broadcast %9 : vector<1x128xf32> to vector<8x128xf32>
    %12 = arith.addf %10, %11 : vector<8x128xf32>
    %cst_10 = arith.constant 0.000000e+00 : f32
    %13 = vector.broadcast %cst_10 : f32 to vector<8x128xf32>
    %14 = arith.maximumf %12, %13 : vector<8x128xf32>
    %c0_11 = arith.constant 0 : index
    %c0_12 = arith.constant 0 : index
    %15 = vector.load %arg4[%c0_11, %c0_12] : memref<128x128xf32, #tpu.memory_space<vmem>>, vector<128x128xf32>
    %c0_13 = arith.constant 0 : index
    %c256 = arith.constant 256 : index
    %16 = vector.load %arg5[%c0_13, %c256] : memref<1x384xf32, #tpu.memory_space<vmem>>, vector<1x128xf32>
    %cst_14 = arith.constant dense<0.000000e+00> : vector<8x128xf32>
    %17 = tpu.matmul %14, %15, %cst_14 {dimension_numbers = #tpu.dot_dimension_numbers<[1], [0], [0], [1], [0, 0, 1, 1], [], []>} : vector<8x128xf32>, vector<128x128xf32>, vector<8x128xf32> -> vector<8x128xf32>
    %18 = vector.broadcast %16 : vector<1x128xf32> to vector<8x128xf32>
    %19 = arith.addf %17, %18 : vector<8x128xf32>
    %20 = math.tanh %19 : vector<8x128xf32>
    %21 = vector.extract_strided_slice %20 {offsets = [0, 0], sizes = [8, 4], strides = [1, 1]} : vector<8x128xf32> to vector<8x4xf32>
    %c0_15 = arith.constant 0 : index
    %c0_16 = arith.constant 0 : index
    %22 = vector.load %arg6[%c0_15, %c0_16] : memref<8x4xf32, #tpu.memory_space<vmem>>, vector<8x4xf32>
    tpu.vector_store %arg6[%c0_15, %c0_16], %21 {strides = array<i32>} : memref<8x4xf32, #tpu.memory_space<vmem>>, vector<8x4xf32>,
    return
  }
  func.func @transform_0(%arg0: i32) -> (i32, i32) {
    %c0_i32 = arith.constant 0 : i32
    %c0_i32_0 = arith.constant 0 : i32
    return %arg0, %c0_i32 : i32, i32
  }
  func.func @transform_1(%arg0: i32) -> (i32, i32) {
    %c0_i32 = arith.constant 0 : i32
    %c0_i32_0 = arith.constant 0 : i32
    %c0_i32_1 = arith.constant 0 : i32
    return %c0_i32, %c0_i32_0 : i32, i32
  }
  func.func @transform_2(%arg0: i32) -> (i32, i32) {
    %c0_i32 = arith.constant 0 : i32
    %c0_i32_0 = arith.constant 0 : i32
    %c0_i32_1 = arith.constant 0 : i32
    return %c0_i32, %c0_i32_0 : i32, i32
  }
  func.func @transform_3(%arg0: i32) -> (i32, i32) {
    %c0_i32 = arith.constant 0 : i32
    %c0_i32_0 = arith.constant 0 : i32
    %c0_i32_1 = arith.constant 0 : i32
    return %c0_i32, %c0_i32_0 : i32, i32
  }
  func.func @transform_4(%arg0: i32) -> (i32, i32) {
    %c0_i32 = arith.constant 0 : i32
    %c0_i32_0 = arith.constant 0 : i32
    %c0_i32_1 = arith.constant 0 : i32
    return %c0_i32, %c0_i32_0 : i32, i32
  }
  func.func @transform_5(%arg0: i32) -> (i32, i32) {
    %c0_i32 = arith.constant 0 : i32
    %c0_i32_0 = arith.constant 0 : i32
    return %arg0, %c0_i32 : i32, i32
  }
}

</mosaic_0001>

<bundles_post_ra>
// kernel: tpu_custom_call.1
= control target key start
LH: loop header
LB: loop body
LE: loop exit
PB: predicated region body
PF: predicated region fallthrough
CT: control target
= control target key end

     0   :  { %10 = vsyncpa [#allocation3], 0  ;;  %s757_s0 = inlined_call_operand.hbm [shape: f32[8,16], index: 0, kind: input, shape index: {}]   ;;  %s758_s1 = inlined_call_operand.hbm [shape: f32[16,128], index: 1, kind: input, shape index: {}]   ;;  %s759_s2 = inlined_call_operand.hbm [shape: f32[128,128], index: 2, kind: input, shape index: {}]   ;;  %s760_s3 = inlined_call_operand.hbm [shape: f32[128,128], index: 3, kind: input, shape index: {}]   ;;  %s761_s4 = inlined_call_operand.vmem [shape: f32[1,384], index: 4, kind: input, shape index: {}]   ;;  %s762_s5 = inlined_call_operand.vmem [shape: f32[8,4], index: 5, kind: output, shape index: {}]  }
   0x1   :  { %11 = vsyncpa [#allocation5], 0 }
   0x2   :  { %12 = vsyncpa [#allocation8], 0  ;;  %s629_s18 = smov [#allocation4]   ;;  %s535_s22 = scalar_lea.hbm %s758_s1, 256 }
   0x3   :  { %s28_s19 = sshll.u32 %s629_s18, 4  ;;  %p536_p0 = scmp.ne.s32.totalorder %s758_s1, %s535_s22  ;;  %s29_s19 = int_to_ptr.vmem [resolvable:$true] %s28_s19 }
   0x4   :  { %p539_p1 = scmp.lt.u32.totalorder %s535_s22, %s758_s1 }
   0x6   :  { %p541_p2 = pnand %p539_p1, %p536_p0 }
   0x8   :  { %544 = shalt.err (!%p541_p2)
}
   0x9   :  { %s545_s27 = scalar_lea.vmem %s29_s19, 256  ;;  %p550_p4 = scmp.lt.s32.totalorder %s29_s19, %s29_s19 }
   0xa   :  { %p546_p3 = scmp.ne.s32.totalorder %s29_s19, %s545_s27  ;;  %p551_p5 = scmp.lt.s32.totalorder %s545_s27, %s545_s27 }
   0xc   :  { %p552_p6 = por %p551_p5, %p550_p4 }
   0xe   :  { %p553_p7 = pnand %p552_p6, %p546_p3 }
  0x10   :  { %556 = shalt.err (!%p553_p7)
}
  0x11   :  { %s630_s28 = smov 128   ;;  %s631_s29 = smov 8  }
  0x12   :  { %34 = dma.hbm_to_vmem [thread:$0]  %s758_s1, 256, %s29_s19, [#allocation5], %s630_s28, %s630_s28, %s631_s29  }
  0x13   :  { %s632_s7 = smov [#allocation2]   ;;  %s633_s9 = smov [#allocation6]  }
  0x14   :  { %s19_s8 = sshll.u32 %s632_s7, 4  ;;  %s40_s10 = sshll.u32 %s633_s9, 4  ;;  %s20_s8 = int_to_ptr.vmem [resolvable:$true] %s19_s8  ;;  %s41_s10 = int_to_ptr.vmem [resolvable:$true] %s40_s10 }
  0x15   :  { %s557_s13 = scalar_lea.hbm %s757_s0, 128 }
  0x16   :  { %p558_p8 = scmp.ne.s32.totalorder %s757_s0, %s557_s13  ;;  %p561_p9 = scmp.lt.u32.totalorder %s557_s13, %s757_s0 }
  0x18   :  { %p563_p10 = pnand %p561_p9, %p558_p8 }
  0x1a   :  { %566 = shalt.err (!%p563_p10)
}
  0x1b   :  { %s567_s1 = scalar_lea.vmem %s20_s8, 128  ;;  %p572_p12 = scmp.lt.s32.totalorder %s20_s8, %s20_s8 }
  0x1c   :  { %p568_p11 = scmp.ne.s32.totalorder %s20_s8, %s567_s1  ;;  %p573_p13 = scmp.lt.s32.totalorder %s567_s1, %s567_s1 }
  0x1e   :  { %p574_p0 = por %p573_p13, %p572_p12 }
  0x20   :  { %p575_p1 = pnand %p574_p0, %p568_p11 }
  0x22   :  { %578 = shalt.err (!%p575_p1)
}
  0x23   :  { %22 = dma.hbm_to_vmem [thread:$0]  %s757_s0, 128, %s20_s8, [#allocation3]  }
  0x24   :  { %s579_s22 = scalar_lea.hbm %s759_s2, 2048 }
  0x25   :  { %p580_p2 = scmp.ne.s32.totalorder %s759_s2, %s579_s22  ;;  %p583_p3 = scmp.lt.u32.totalorder %s579_s22, %s759_s2 }
  0x27   :  { %p585_p4 = pnand %p583_p3, %p580_p2 }
  0x29   :  { %588 = shalt.err (!%p585_p4)
}
  0x2a   :  { %s589_s27 = scalar_lea.vmem %s41_s10, 2048  ;;  %p594_p6 = scmp.lt.s32.totalorder %s41_s10, %s41_s10 }
  0x2b   :  { %p590_p5 = scmp.ne.s32.totalorder %s41_s10, %s589_s27  ;;  %p595_p7 = scmp.lt.s32.totalorder %s589_s27, %s589_s27 }
  0x2d   :  { %p596_p8 = por %p595_p7, %p594_p6 }
  0x2f   :  { %p597_p9 = pnand %p596_p8, %p590_p5 }
  0x31   :  { %600 = shalt.err (!%p597_p9)
}
  0x32   :  { %46 = dma.hbm_to_vmem [thread:$0]  %s759_s2, 2048, %s41_s10, [#allocation5], %s630_s28, %s630_s28, %s631_s29  }
  0x33   :  { %s634_s6 = smov [#allocation7]   ;;  %s601_s11 = scalar_lea.hbm %s760_s3, 2048 }
  0x34   :  { %s52_s7 = sshll.u32 %s634_s6, 4  ;;  %p602_p10 = scmp.ne.s32.totalorder %s760_s3, %s601_s11  ;;  %s53_s7 = int_to_ptr.vmem [resolvable:$true] %s52_s7 }
  0x35   :  { %p605_p11 = scmp.lt.u32.totalorder %s601_s11, %s760_s3 }
  0x37   :  { %p607_p12 = pnand %p605_p11, %p602_p10 }
  0x39   :  { %610 = shalt.err (!%p607_p12)
}
  0x3a   :  { %s611_s16 = scalar_lea.vmem %s53_s7, 2048  ;;  %p616_p0 = scmp.lt.s32.totalorder %s53_s7, %s53_s7 }
  0x3b   :  { %p612_p13 = scmp.ne.s32.totalorder %s53_s7, %s611_s16  ;;  %p617_p1 = scmp.lt.s32.totalorder %s611_s16, %s611_s16 }
  0x3d   :  { %p618_p2 = por %p617_p1, %p616_p0 }
  0x3f   :  { %p619_p3 = pnand %p618_p2, %p612_p13 }
  0x41   :  { %622 = shalt.err (!%p619_p3)
}
  0x42   :  { %58 = dma.hbm_to_vmem [thread:$0]  %s760_s3, 2048, %s53_s7, [#allocation8], %s630_s28, %s630_s28, %s631_s29  }
  0x43   :  { %623 = dma.done.wait [#allocation3], 128  }
  0x44   :  { %624 = vsyncadd [#allocation3], 4294967168 }
  0x45   :  { %625 = dma.done.wait [#allocation5], 2304  }
  0x46   :  { %626 = vsyncadd [#allocation5], 4294964992 }
  0x47   :  { %627 = dma.done.wait [#allocation8], 2048  }
  0x48   :  { %628 = vsyncadd [#allocation8], 4294965248  ;;  %v635_v0 = vmov 0.0|0.0   ;;  %vm636_vm0 = vmmov 0   ;;  %v637_v1 = vmov 0.0   ;;  %v74_v2 = vld [vmem:[#allocation4] sm:$0xff] }
  0x49   :  { %473 = vmatprep.subr.bf16.mxu0 %v635_v0  ;;  %400 = vmatprep.mubr.msk.f32.mxu0 %vm636_vm0, %v637_v1  ;;  %v75_v3 = vld [vmem:[#allocation4 + $0x8] sm:$0xff]  ;;  %v158_v5 = vld [vmem:[#allocation6] sm:$0xff]  ;;  %v159_v6 = vld [vmem:[#allocation6 + $0x8] sm:$0xff]  ;;  %vm83_vm1 = vcmask 130048   ;;  %vm346_vm2 = vcmask 31744  }
  0x4a   :  { %476 = vmatprep.subr.bf16.mxu1 %v635_v0  ;;  %435 = vmatprep.mubr.msk.f32.mxu1 %vm636_vm0, %v637_v1  ;;  %v474_v4 = vpack.c.bf16 %v75_v3, %v74_v2  ;;  %v160_v7 = vld [vmem:[#allocation6 + $0x10] sm:$0xff]  ;;  %v477_v8 = vpack.c.bf16 %v159_v6, %v158_v5  ;;  %v161_v9 = vld [vmem:[#allocation6 + $0x18] sm:$0xff]  ;;  %v73_v10 = vld [vmem:[#allocation2] sm:$0xff] }
  0x4b   :  { %v480_v11 = vpack.c.bf16 %v161_v9, %v160_v7  ;;  %v162_v12 = vld [vmem:[#allocation6 + $0x20] sm:$0xff]  ;;  %v163_v13 = vld [vmem:[#allocation6 + $0x28] sm:$0xff]  ;;  %v164_v15 = vld [vmem:[#allocation6 + $0x30] sm:$0xff] }
  0x4c   :  { %475 = vmatpush3.bf16.msra.mxu0 %v474_v4  ;;  %478 = vmatpush3.bf16.msra.mxu1 %v477_v8  ;;  %v483_v14 = vpack.c.bf16 %v163_v13, %v162_v12  ;;  %v165_v16 = vld [vmem:[#allocation6 + $0x38] sm:$0xff]  ;;  %v166_v18 = vld [vmem:[#allocation6 + $0x40] sm:$0xff]  ;;  %v167_v19 = vld [vmem:[#allocation6 + $0x48] sm:$0xff] }
  0x4d   :  { %500 = vmatprep.subr.bf16.mxu0 %v635_v0  ;;  %479 = vmatprep.subr.bf16.mxu1 %v635_v0  ;;  %v486_v17 = vpack.c.bf16 %v165_v16, %v164_v15  ;;  %v489_v20 = vpack.c.bf16 %v167_v19, %v166_v18  ;;  %v168_v21 = vld [vmem:[#allocation6 + $0x50] sm:$0xff]  ;;  %v169_v22 = vld [vmem:[#allocation6 + $0x58] sm:$0xff]  ;;  %v170_v24 = vld [vmem:[#allocation6 + $0x60] sm:$0xff] }
  0x4e   :  { %v492_v23 = vpack.c.bf16 %v169_v22, %v168_v21  ;;  %v171_v25 = vld [vmem:[#allocation6 + $0x68] sm:$0xff]  ;;  %v172_v27 = vld [vmem:[#allocation6 + $0x70] sm:$0xff]  ;;  %v173_v28 = vld [vmem:[#allocation6 + $0x78] sm:$0xff] }
  0x4f   :  { %401 = vmatmul.mubr.msk.f32.vlgmr.msra.gmra.mrb[0].mxu0 %vm83_vm1, %v73_v10  ;;  %v495_v26 = vpack.c.bf16 %v171_v25, %v170_v24  ;;  %v498_v29 = vpack.c.bf16 %v173_v28, %v172_v27  ;;  %v252_v30 = vld [vmem:[#allocation7] sm:$0xff]  ;;  %v253_v31 = vld [vmem:[#allocation7 + $0x8] sm:$0xff]  ;;  %v254_v32 = vld [vmem:[#allocation7 + $0x10] sm:$0xff] }
  0x50   :  { %470 = vmatprep.mubr.msk.f32.mxu0 %vm636_vm0, %v637_v1  ;;  %481 = vmatpush3.bf16.msra.mxu1 %v480_v11  ;;  %v501_v33 = vpack.c.bf16 %v253_v31, %v252_v30  ;;  %v255_v34 = vld [vmem:[#allocation7 + $0x18] sm:$0xff]  ;;  %v256_v36 = vld [vmem:[#allocation7 + $0x20] sm:$0xff]  ;;  %v257_v37 = vld [vmem:[#allocation7 + $0x28] sm:$0xff] }
  0x51   :  { %482 = vmatprep.subr.bf16.mxu1 %v635_v0  ;;  %v504_v35 = vpack.c.bf16 %v255_v34, %v254_v32  ;;  %v507_v38 = vpack.c.bf16 %v257_v37, %v256_v36  ;;  %v258_v39 = vld [vmem:[#allocation7 + $0x30] sm:$0xff]  ;;  %v259_v40 = vld [vmem:[#allocation7 + $0x38] sm:$0xff]  ;;  %v260_v42 = vld [vmem:[#allocation7 + $0x40] sm:$0xff] }
  0x52   :  { %502 = vmatpush3.bf16.msra.mxu0 %v501_v33  ;;  %v510_v41 = vpack.c.bf16 %v259_v40, %v258_v39  ;;  %v261_v43 = vld [vmem:[#allocation7 + $0x48] sm:$0xff]  ;;  %v262_v45 = vld [vmem:[#allocation7 + $0x50] sm:$0xff]  ;;  %v263_v46 = vld [vmem:[#allocation7 + $0x58] sm:$0xff] }
  0x53   :  { %503 = vmatprep.subr.bf16.mxu0 %v635_v0  ;;  %v513_v44 = vpack.c.bf16 %v261_v43, %v260_v42  ;;  %v516_v47 = vpack.c.bf16 %v263_v46, %v262_v45  ;;  %v264_v48 = vld [vmem:[#allocation7 + $0x60] sm:$0xff]  ;;  %v265_v49 = vld [vmem:[#allocation7 + $0x68] sm:$0xff]  ;;  %v266_v56 = vld [vmem:[#allocation7 + $0x70] sm:$0xff] }
  0x54   :  { %484 = vmatpush3.bf16.msra.mxu1 %v483_v14  ;;  %v519_v50 = vpack.c.bf16 %v265_v49, %v264_v48  ;;  %v355_v51 = vld [vmem:[%s761_s4] ss:$0 sm:$0xff]  ;;  %v267_v57 = vld [vmem:[#allocation7 + $0x78] sm:$0xff]  ;;  %v357_v59 = vld [vmem:[%s761_s4 + $0x1] ss:$0 sm:$0xff] }
  0x55   :  { %485 = vmatprep.subr.bf16.mxu1 %v635_v0  ;;  %v522_v58 = vpack.c.bf16 %v267_v57, %v266_v56 }
  0x56   :  { %505 = vmatpush3.bf16.msra.mxu0 %v504_v35 }
  0x57   :  { %506 = vmatprep.subr.bf16.mxu0 %v635_v0 }
  0x58   :  { %487 = vmatpush3.bf16.msra.mxu1 %v486_v17 }
  0x59   :  { %488 = vmatprep.subr.bf16.mxu1 %v635_v0 }
  0x5a   :  { %508 = vmatpush3.bf16.msra.mxu0 %v507_v38 }
  0x5b   :  { %509 = vmatprep.subr.bf16.mxu0 %v635_v0 }
  0x5c   :  { %490 = vmatpush3.bf16.msra.mxu1 %v489_v20 }
  0x5d   :  { %491 = vmatprep.subr.bf16.mxu1 %v635_v0 }
  0x5e   :  { %511 = vmatpush3.bf16.msra.mxu0 %v510_v41 }
  0x5f   :  { %512 = vmatprep.subr.bf16.mxu0 %v635_v0 }
  0x60   :  { %493 = vmatpush3.bf16.msra.mxu1 %v492_v23 }
  0x61   :  { %494 = vmatprep.subr.bf16.mxu1 %v635_v0 }
  0x62   :  { %514 = vmatpush3.bf16.msra.mxu0 %v513_v44 }
  0x63   :  { %515 = vmatprep.subr.bf16.mxu0 %v635_v0 }
  0x64   :  { %496 = vmatpush3.bf16.msra.mxu1 %v495_v26 }
  0x65   :  { %497 = vmatprep.subr.bf16.mxu1 %v635_v0 }
  0x66   :  { %517 = vmatpush3.bf16.msra.mxu0 %v516_v47 }
  0x67   :  { %518 = vmatprep.subr.bf16.mxu0 %v635_v0 }
  0x68   :  { %499 = vmatpush3.bf16.msra.mxu1 %v498_v29 }
  0x6a   :  { %520 = vmatpush3.bf16.msra.mxu0 %v519_v50 }
  0x6b   :  { %521 = vmatprep.subr.bf16.mxu0 %v635_v0  ;;  %v358_v0 = vld [vmem:[%s761_s4 + $0x2] ss:$0 sm:$0xff] }
  0x6e   :  { %523 = vmatpush3.bf16.msra.mxu0 %v522_v58 }
 0x122   :  { %v153_v52 = vpop.f32.mrb[0].mxu0 }
 0x123   :  { %v154_v53 = vadd.f32 %v355_v51, %v153_v52  ;;  %v402_v54 = vpop.f32.mrb[1].mxu0 }
 0x125   :  { %v157_v55 = vmax.f32 %v154_v53, 0.0 }
 0x127   :  { %436 = vmatmul.mubr.f32.vlgmr.msra.gmra.mrb[0].mxu1 %v157_v55 }
 0x1fa   :  { %v247_v60 = vpop.f32.mrb[0].mxu1 }
 0x1fb   :  { %v248_v61 = vadd.f32 %v357_v59, %v247_v60  ;;  %v437_v62 = vpop.f32.mrb[1].mxu1 }
 0x1fd   :  { %v251_v63 = vmax.f32 %v248_v61, 0.0 }
 0x1ff   :  { %471 = vmatmul.mubr.f32.vlgmr.msra.gmra.mrb[2].mxu0 %v251_v63 }
 0x2d2   :  { %v341_v1 = vpop.f32.mrb[2].mxu0 }
 0x2d3   :  { %v342_v2 = vadd.f32 %v358_v0, %v341_v1  ;;  %v472_v3 = vpop.f32.mrb[3].mxu0 }
 0x2d5   :  { %533 = vtanh.f32 %v342_v2 }
 0x2df   :  { %v534_v4 = vpop.eup %533 }
 0x2e0   :  { %347 = vst.msk [vmem:[%s762_s5] sm:$0xff] %vm346_vm2, %v534_v4 }
 0x2e1   :  { %352 = vsyncpa [#allocation3], 1 }
 0x2e2   :  { %353 = vsyncpa [#allocation5], 1 }
 0x2e3   :  { %354 = vsyncpa [#allocation8], 1 }

</bundles_post_ra>
